<compile_context>
chip_gen: v6e
topology: v6e:2x2x1
jax: 0.10.0
libtpu: 0.0.40
codegen_flags: <defaults>
</compile_context>

<pallas_src>
import functools

import jax
import jax.numpy as jnp
from jax.experimental import pallas as pl
from jax.experimental.pallas import tpu as pltpu


LANE = 128  # vreg lane width


def _round_up(x, m):
    return ((x + m - 1) // m) * m


def mlp_kernel(x_ref, w1_ref, b1_ref, w2_ref, b2_ref, o_ref):
    # fc1: (TB, in) @ (in, H) -> f32 accumulate, bias + ReLU in f32.
    h = jnp.dot(x_ref[...], w1_ref[...], preferred_element_type=jnp.float32)
    h = jnp.maximum(h + b1_ref[...], 0.0)
    # fc2: cast back to the MXU input dtype, accumulate in f32, add bias.
    y = jnp.dot(h.astype(w2_ref.dtype), w2_ref[...],
                preferred_element_type=jnp.float32)
    y = y + b2_ref[...]
    o_ref[...] = y.astype(o_ref.dtype)


@functools.partial(jax.jit, static_argnames=("block_batch", "compute_dtype"))
def mlp_forward(x, w1, b1, w2, b2, *, block_batch=256,
                compute_dtype=jnp.bfloat16):
    """MLP forward matching nn.Linear(in,h) -> ReLU -> nn.Linear(h,out).

    x:  [B, in]      (f32)
    w1: [in, hidden] (transposed vs. PyTorch), b1: [1, hidden]
    w2: [hidden, out]                        , b2: [1, out]
    Returns [B, out] in x.dtype (f32).
    """
    B, in_f = x.shape
    hid_f = w1.shape[1]
    out_f = w2.shape[1]
    out_dtype = x.dtype

    # --- pad feature dims to lane width (128) so everything is lane-dense ---
    in_p = _round_up(in_f, LANE)
    hid_p = _round_up(hid_f, LANE)
    out_p = _round_up(out_f, LANE)

    # --- batch tile: multiple of the sublane packing for the compute dtype ---
    sub = 16 if compute_dtype == jnp.bfloat16 else 8
    TB = max(sub, min(_round_up(block_batch, sub), _round_up(B, sub)))
    B_p = _round_up(B, TB)

    # Zero-padding is semantics-preserving: padded W rows/cols and padded
    # bias entries are 0, padded batch rows / output cols are sliced off.
    x_p = jnp.zeros((B_p, in_p), x.dtype).at[:B, :in_f].set(x)
    x_p = x_p.astype(compute_dtype)
    w1_p = jnp.zeros((in_p, hid_p), jnp.float32).at[:in_f, :hid_f].set(w1)
    w1_p = w1_p.astype(compute_dtype)
    w2_p = jnp.zeros((hid_p, out_p), jnp.float32).at[:hid_f, :out_f].set(w2)
    w2_p = w2_p.astype(compute_dtype)
    b1_p = jnp.zeros((1, hid_p), jnp.float32).at[:, :hid_f].set(b1)
    b2_p = jnp.zeros((1, out_p), jnp.float32).at[:, :out_f].set(b2)

    grid = (B_p // TB,)

    # --- VMEM budget: resident weights/biases + double-buffered x/out tiles
    # --- + the f32 intermediate, with 2x headroom, capped for v7x (64 MiB).
    csize = jnp.dtype(compute_dtype).itemsize
    budget = (
        (in_p * hid_p + hid_p * out_p) * csize          # resident weights
        + (hid_p + out_p) * 4                            # resident biases
        + 2 * TB * in_p * csize                          # double-buffered x
        + 2 * TB * out_p * 4                             # double-buffered out
        + TB * hid_p * 4                                 # f32 intermediate h
    )
    vmem_limit = int(min(max(2 * budget, 16 * 2**20), 64 * 2**20))

    flops = 2 * B_p * (in_p * hid_p + hid_p * out_p)
    bytes_accessed = (x_p.size * csize + w1_p.size * csize + w2_p.size * csize
                      + b1_p.size * 4 + b2_p.size * 4 + B_p * out_p * 4)

    out_p_arr = pl.pallas_call(
        mlp_kernel,
        out_shape=jax.ShapeDtypeStruct((B_p, out_p), out_dtype),
        grid_spec=pltpu.PrefetchScalarGridSpec(
            num_scalar_prefetch=0,
            grid=grid,
            in_specs=[
                pl.BlockSpec((TB, in_p), lambda i: (i, 0)),     # x tile
                pl.BlockSpec((in_p, hid_p), lambda i: (0, 0)),  # W1 resident
                pl.BlockSpec((1, hid_p), lambda i: (0, 0)),     # b1 resident
                pl.BlockSpec((hid_p, out_p), lambda i: (0, 0)), # W2 resident
                pl.BlockSpec((1, out_p), lambda i: (0, 0)),     # b2 resident
            ],
            out_specs=pl.BlockSpec((TB, out_p), lambda i: (i, 0)),
        ),
        compiler_params=pltpu.CompilerParams(
            dimension_semantics=("parallel",),   # megacore on v7x, neutral else
            vmem_limit_bytes=vmem_limit,
        ),
        cost_estimate=pl.CostEstimate(
            flops=flops, transcendentals=0, bytes_accessed=bytes_accessed),
    )(x_p, w1_p, b1_p, w2_p, b2_p)

    # TODO(synk): for very large hidden_features (W1+W2 > ~half VMEM), add
    # K/N reduction grid axes with a pl.when-initialized f32 accumulator
    # instead of fully-resident weights.
    return out_p_arr[:B, :out_f]


def init_params(key, in_features, hidden_features, out_features):
    """Deterministic init matching nn.Linear's uniform(-1/sqrt(fan_in), ...)."""
    k1, k2, k3, k4 = jax.random.split(key, 4)
    lim1 = 1.0 / jnp.sqrt(in_features)
    lim2 = 1.0 / jnp.sqrt(hidden_features)
    # Stored as (in, out): transposed relative to PyTorch's (out, in).
    w1 = jax.random.uniform(k1, (in_features, hidden_features),
                            minval=-lim1, maxval=lim1, dtype=jnp.float32)
    b1 = jax.random.uniform(k2, (1, hidden_features),
                            minval=-lim1, maxval=lim1, dtype=jnp.float32)
    w2 = jax.random.uniform(k3, (hidden_features, out_features),
                            minval=-lim2, maxval=lim2, dtype=jnp.float32)
    b2 = jax.random.uniform(k4, (1, out_features),
                            minval=-lim2, maxval=lim2, dtype=jnp.float32)
    return w1, b1, w2, b2


if __name__ == "__main__":
    in_features = 32
    hidden_features = 64
    out_features = 16
    batch = 8

    key = jax.random.PRNGKey(0)
    kx, kp = jax.random.split(key)

    x = jax.random.normal(kx, (batch, in_features), dtype=jnp.float32)
    w1, b1, w2, b2 = init_params(kp, in_features, hidden_features, out_features)

    out = mlp_forward(x, w1, b1, w2, b2)
    jax.block_until_ready(out)
    assert out.shape == (batch, out_features)

    # Reference in plain JAX (same semantics as the PyTorch module), f32.
    ref_f32 = jnp.maximum(x @ w1 + b1, 0.0) @ w2 + b2
    # bf16 MXU inputs with f32 accumulation => loosened tolerance vs f32 ref.
    assert jnp.allclose(out, ref_f32, atol=5e-2, rtol=5e-2), (
        jnp.max(jnp.abs(out - ref_f32)))

    # Tighter check against a reference using the same bf16-cast operands.
    xb = x.astype(jnp.bfloat16).astype(jnp.float32)
    w1b = w1.astype(jnp.bfloat16).astype(jnp.float32)
    w2b = w2.astype(jnp.bfloat16).astype(jnp.float32)
    hb = jnp.maximum(xb @ w1b + b1, 0.0)
    ref_bf16 = hb.astype(jnp.bfloat16).astype(jnp.float32) @ w2b + b2
    assert jnp.allclose(out, ref_bf16, atol=2e-3, rtol=2e-2), (
        jnp.max(jnp.abs(out - ref_bf16)))

    print("KERNEL_OK")
</pallas_src>

<mosaic_0001>
module attributes {stable_mosaic.version = 11 : i64} {
  func.func @mlp_kernel(%arg0: i32, %arg1: memref<16x128xbf16, #tpu.memory_space<vmem>>, %arg2: memref<128x128xbf16, #tpu.memory_space<vmem>>, %arg3: memref<1x128xf32, #tpu.memory_space<vmem>>, %arg4: memref<128x128xbf16, #tpu.memory_space<vmem>>, %arg5: memref<1x128xf32, #tpu.memory_space<vmem>>, %arg6: memref<16x128xf32, #tpu.memory_space<vmem>>) attributes {dimension_semantics = [#tpu.dimension_semantics<parallel>], iteration_bounds = array<i64: 1>, scalar_prefetch = 0 : i64, scratch_operands = 0 : i64, tpu.core_type = #tpu.core_type<tc>, window_params = [{transform_indices = @transform_0, window_bounds = array<i64: 16, 128>}, {pipeline_mode = #tpu.pipeline_mode<synchronous>, transform_indices = @transform_1, window_bounds = array<i64: 128, 128>}, {pipeline_mode = #tpu.pipeline_mode<synchronous>, transform_indices = @transform_2, window_bounds = array<i64: 1, 128>}, {pipeline_mode = #tpu.pipeline_mode<synchronous>, transform_indices = @transform_3, window_bounds = array<i64: 128, 128>}, {pipeline_mode = #tpu.pipeline_mode<synchronous>, transform_indices = @transform_4, window_bounds = array<i64: 1, 128>}, {transform_indices = @transform_5, window_bounds = array<i64: 16, 128>}]} {
    %c0 = arith.constant 0 : index
    %c0_0 = arith.constant 0 : index
    %0 = vector.load %arg1[%c0, %c0_0] : memref<16x128xbf16, #tpu.memory_space<vmem>>, vector<16x128xbf16>
    %c0_1 = arith.constant 0 : index
    %c0_2 = arith.constant 0 : index
    %1 = vector.load %arg2[%c0_1, %c0_2] : memref<128x128xbf16, #tpu.memory_space<vmem>>, vector<128x128xbf16>
    %cst = arith.constant dense<0.000000e+00> : vector<16x128xf32>
    %2 = tpu.matmul %0, %1, %cst {dimension_numbers = #tpu.dot_dimension_numbers<[1], [0], [0], [1], [0, 0, 1, 1], [], []>} : vector<16x128xbf16>, vector<128x128xbf16>, vector<16x128xf32> -> vector<16x128xf32>
    %c0_3 = arith.constant 0 : index
    %c0_4 = arith.constant 0 : index
    %3 = vector.load %arg3[%c0_3, %c0_4] : memref<1x128xf32, #tpu.memory_space<vmem>>, vector<1x128xf32>
    %4 = vector.broadcast %3 : vector<1x128xf32> to vector<16x128xf32>
    %5 = arith.addf %2, %4 : vector<16x128xf32>
    %cst_5 = arith.constant 0.000000e+00 : f32
    %6 = vector.broadcast %cst_5 : f32 to vector<16x128xf32>
    %7 = arith.maximumf %5, %6 : vector<16x128xf32>
    %8 = arith.truncf %7 : vector<16x128xf32> to vector<16x128xbf16>
    %c0_6 = arith.constant 0 : index
    %c0_7 = arith.constant 0 : index
    %9 = vector.load %arg4[%c0_6, %c0_7] : memref<128x128xbf16, #tpu.memory_space<vmem>>, vector<128x128xbf16>
    %cst_8 = arith.constant dense<0.000000e+00> : vector<16x128xf32>
    %10 = tpu.matmul %8, %9, %cst_8 {dimension_numbers = #tpu.dot_dimension_numbers<[1], [0], [0], [1], [0, 0, 1, 1], [], []>} : vector<16x128xbf16>, vector<128x128xbf16>, vector<16x128xf32> -> vector<16x128xf32>
    %c0_9 = arith.constant 0 : index
    %c0_10 = arith.constant 0 : index
    %11 = vector.load %arg5[%c0_9, %c0_10] : memref<1x128xf32, #tpu.memory_space<vmem>>, vector<1x128xf32>
    %12 = vector.broadcast %11 : vector<1x128xf32> to vector<16x128xf32>
    %13 = arith.addf %10, %12 : vector<16x128xf32>
    %c0_11 = arith.constant 0 : index
    %c0_12 = arith.constant 0 : index
    %14 = vector.load %arg6[%c0_11, %c0_12] : memref<16x128xf32, #tpu.memory_space<vmem>>, vector<16x128xf32>
    tpu.vector_store %arg6[%c0_11, %c0_12], %13 {strides = array<i32>} : memref<16x128xf32, #tpu.memory_space<vmem>>, vector<16x128xf32>,
    return
  }
  func.func @transform_0(%arg0: i32) -> (i32, i32) {
    %c0_i32 = arith.constant 0 : i32
    %c0_i32_0 = arith.constant 0 : i32
    return %arg0, %c0_i32 : i32, i32
  }
  func.func @transform_1(%arg0: i32) -> (i32, i32) {
    %c0_i32 = arith.constant 0 : i32
    %c0_i32_0 = arith.constant 0 : i32
    %c0_i32_1 = arith.constant 0 : i32
    return %c0_i32, %c0_i32_0 : i32, i32
  }
  func.func @transform_2(%arg0: i32) -> (i32, i32) {
    %c0_i32 = arith.constant 0 : i32
    %c0_i32_0 = arith.constant 0 : i32
    %c0_i32_1 = arith.constant 0 : i32
    return %c0_i32, %c0_i32_0 : i32, i32
  }
  func.func @transform_3(%arg0: i32) -> (i32, i32) {
    %c0_i32 = arith.constant 0 : i32
    %c0_i32_0 = arith.constant 0 : i32
    %c0_i32_1 = arith.constant 0 : i32
    return %c0_i32, %c0_i32_0 : i32, i32
  }
  func.func @transform_4(%arg0: i32) -> (i32, i32) {
    %c0_i32 = arith.constant 0 : i32
    %c0_i32_0 = arith.constant 0 : i32
    %c0_i32_1 = arith.constant 0 : i32
    return %c0_i32, %c0_i32_0 : i32, i32
  }
  func.func @transform_5(%arg0: i32) -> (i32, i32) {
    %c0_i32 = arith.constant 0 : i32
    %c0_i32_0 = arith.constant 0 : i32
    return %arg0, %c0_i32 : i32, i32
  }
}

</mosaic_0001>

<bundles_post_ra>
// kernel: mlp_forward.1
= control target key start
LH: loop header
LB: loop body
LE: loop exit
PB: predicated region body
PF: predicated region fallthrough
CT: control target
= control target key end

     0   :  { %v358_v0 = vmov 0.0   ;;  %vm359_vm0 = vmmov 0   ;;  %s453_s1 = inlined_call_operand.vmem [shape: bf16[128,128], index: 1, kind: input, shape index: {}]   ;;  %s454_s3 = inlined_call_operand.vmem [shape: bf16[128,128], index: 3, kind: input, shape index: {}]   ;;  %s455_s0 = inlined_call_operand.vmem [shape: bf16[16,128], index: 0, kind: input, shape index: {}]   ;;  %s456_s2 = inlined_call_operand.vmem [shape: f32[1,128], index: 2, kind: input, shape index: {}]   ;;  %s457_s4 = inlined_call_operand.vmem [shape: f32[1,128], index: 4, kind: input, shape index: {}]   ;;  %s458_s5 = inlined_call_operand.vmem [shape: f32[16,128], index: 5, kind: output, shape index: {}]  }
   0x1   :  { %299 = vmatprep.subr.bf16.mxu0 %v358_v0  ;;  %v341_v1 = vld [vmem:[%s453_s1 + $0x38] sm:$0xff]   ;;  %315 = vmatprep.mubr.msk.bf16.mxu0 %vm359_vm0, %v358_v0  ;;  %v342_v2 = vld [vmem:[%s453_s1 + $0x30] sm:$0xff]   ;;  %v343_v3 = vld [vmem:[%s453_s1 + $0x28] sm:$0xff]  }
   0x2   :  { %319 = vmatprep.subr.bf16.mxu1 %v358_v0  ;;  %335 = vmatprep.mubr.msk.bf16.mxu1 %vm359_vm0, %v358_v0  ;;  %v350_v4 = vld [vmem:[%s454_s3 + $0x38] sm:$0xff]   ;;  %v344_v5 = vld [vmem:[%s453_s1 + $0x20] sm:$0xff]   ;;  %v351_v6 = vld [vmem:[%s454_s3 + $0x30] sm:$0xff]  }
   0x3   :  { %300 = vmatpush3.bf16.msra.mxu0 %v341_v1  ;;  %320 = vmatpush3.bf16.msra.mxu1 %v350_v4  ;;  %v345_v7 = vld [vmem:[%s453_s1 + $0x18] sm:$0xff]   ;;  %v352_v8 = vld [vmem:[%s454_s3 + $0x28] sm:$0xff]   ;;  %v346_v9 = vld [vmem:[%s453_s1 + $0x10] sm:$0xff]  }
   0x4   :  { %301 = vmatprep.subr.bf16.mxu0 %v358_v0  ;;  %321 = vmatprep.subr.bf16.mxu1 %v358_v0  ;;  %v353_v10 = vld [vmem:[%s454_s3 + $0x20] sm:$0xff]   ;;  %v347_v11 = vld [vmem:[%s453_s1 + $0x8] sm:$0xff]   ;;  %v354_v12 = vld [vmem:[%s454_s3 + $0x18] sm:$0xff]  }
   0x5   :  { %v348_v13 = vld [vmem:[%s453_s1] sm:$0xff]   ;;  %v355_v15 = vld [vmem:[%s454_s3 + $0x10] sm:$0xff]   ;;  %v356_v16 = vld [vmem:[%s454_s3 + $0x8] sm:$0xff]  }
   0x6   :  { %v349_v14 = vld [vmem:[%s455_s0] sm:$0xff]  }
   0x7   :  { %302 = vmatpush3.bf16.msra.mxu0 %v342_v2  ;;  %322 = vmatpush3.bf16.msra.mxu1 %v351_v6  ;;  %v357_v17 = vld [vmem:[%s454_s3] sm:$0xff]  }
   0x8   :  { %303 = vmatprep.subr.bf16.mxu0 %v358_v0  ;;  %323 = vmatprep.subr.bf16.mxu1 %v358_v0  ;;  %v262_v18 = vld [vmem:[%s456_s2] ss:$0 sm:$0xff] }
   0x9   :  { %v272_v28 = vld [vmem:[%s457_s4] ss:$0 sm:$0xff] }
   0xb   :  { %304 = vmatpush3.bf16.msra.mxu0 %v343_v3  ;;  %324 = vmatpush3.bf16.msra.mxu1 %v352_v8 }
   0xc   :  { %305 = vmatprep.subr.bf16.mxu0 %v358_v0  ;;  %325 = vmatprep.subr.bf16.mxu1 %v358_v0 }
   0xf   :  { %306 = vmatpush3.bf16.msra.mxu0 %v344_v5  ;;  %326 = vmatpush3.bf16.msra.mxu1 %v353_v10 }
  0x10   :  { %307 = vmatprep.subr.bf16.mxu0 %v358_v0  ;;  %327 = vmatprep.subr.bf16.mxu1 %v358_v0 }
  0x13   :  { %308 = vmatpush3.bf16.msra.mxu0 %v345_v7  ;;  %328 = vmatpush3.bf16.msra.mxu1 %v354_v12 }
  0x14   :  { %309 = vmatprep.subr.bf16.mxu0 %v358_v0  ;;  %329 = vmatprep.subr.bf16.mxu1 %v358_v0 }
  0x17   :  { %310 = vmatpush3.bf16.msra.mxu0 %v346_v9  ;;  %330 = vmatpush3.bf16.msra.mxu1 %v355_v15 }
  0x18   :  { %311 = vmatprep.subr.bf16.mxu0 %v358_v0  ;;  %331 = vmatprep.subr.bf16.mxu1 %v358_v0 }
  0x1b   :  { %312 = vmatpush3.bf16.msra.mxu0 %v347_v11  ;;  %332 = vmatpush3.bf16.msra.mxu1 %v356_v16 }
  0x1c   :  { %313 = vmatprep.subr.bf16.mxu0 %v358_v0  ;;  %333 = vmatprep.subr.bf16.mxu1 %v358_v0 }
  0x1f   :  { %314 = vmatpush3.bf16.msra.mxu0 %v348_v13  ;;  %334 = vmatpush3.bf16.msra.mxu1 %v357_v17 }
  0x22   :  { %316 = vmatmul.mubr.bf16.vlgmr.msra.gmra.mxu0 %v349_v14 }
  0xe2   :  { %v134_v19 = vpop.f32.mrf.mxu0 }
  0xe3   :  { %v135_v21 = vadd.f32 %v262_v18, %v134_v19 }
  0xe4   :  { %v317_v20 = vpop.f32.mrf.mxu0 }
  0xe5   :  { %v141_v25 = vmax.f32 %v135_v21, 0.0 }
  0xe6   :  { %v137_v22 = vpop.f32.mrf.mxu0 }
  0xe7   :  { %v138_v23 = vadd.f32 %v262_v18, %v137_v22 }
  0xe8   :  { %v318_v24 = vpop.f32.mrf.mxu0 }
  0xe9   :  { %v142_v26 = vmax.f32 %v138_v23, 0.0 }
  0xeb   :  { %v143_v27 = vpack.c.bf16 %v142_v26, %v141_v25 }
  0xed   :  { %336 = vmatmul.mubr.bf16.vlgmr.msra.gmra.mxu1 %v143_v27 }
 0x1ad   :  { %v249_v29 = vpop.f32.mrf.mxu1 }
 0x1ae   :  { %v250_v30 = vadd.f32 %v272_v28, %v249_v29 }
 0x1af   :  { %v337_v31 = vpop.f32.mrf.mxu1 }
 0x1b0   :  { %256 = vst [vmem:[%s458_s5] sm:$0xff] %v250_v30 }
 0x1b1   :  { %v252_v32 = vpop.f32.mrf.mxu1 }
 0x1b2   :  { %v253_v33 = vadd.f32 %v272_v28, %v252_v32 }
 0x1b3   :  { %v338_v34 = vpop.f32.mrf.mxu1 }
 0x1b4   :  { %257 = vst [vmem:[%s458_s5 + $0x8] sm:$0xff] %v253_v33 }

</bundles_post_ra>
